<compile_context>
chip_gen: v7x
topology: tpu7x:2x2x1
jax: 0.10.0
libtpu: 0.0.40
codegen_flags: <defaults>
</compile_context>

<pallas_src>
import jax
import jax.numpy as jnp
from jax.experimental import pallas as pl
from jax.experimental.pallas import tpu as pltpu


def _pixel_sum_kernel(x_ref, o_ref):
    """One grid step = one (batch-block, segment-block) tile.

    x_ref : (Bb, Tb*3, H, W)  f32 frame pixels (raw NCHW slice, no relayout)
    o_ref : (1, 1, Bb, Tb*3)  per-frame-channel spatial pixel sums
    """
    # Lane-first fused reduction: reduce W (lane axis), then H.  Input is f32
    # so the dtype argument is a no-op; for non-f32 inputs it keeps the
    # accumulation in f32 without materializing a widened copy of the block.
    s = jnp.sum(x_ref[...], axis=-1, dtype=jnp.float32)   # (Bb, Tb*3, H)
    o_ref[0, 0, :, :] = jnp.sum(s, axis=-1)               # (Bb, Tb*3)


def _pick_batch_block(B):
    """Largest divisor of B giving >= 2 batch blocks (so v7x dual-TC can shard)."""
    if B <= 1:
        return 1
    for bb in range(B // 2, 0, -1):
        if B % bb == 0:
            return bb
    return 1


def _default_vmem_limit_bytes():
    """~75% of the chip's VMEM, capped at 100 MiB (96 MiB on v5e/v6e, 48 MiB on v7x)."""
    try:
        cap = int(pltpu.get_tpu_info().vmem_capacity_bytes)
    except Exception:
        cap = 64 * 1024 * 1024          # conservative fallback: v7x per-TC VMEM
    return min((cap * 3) // 4, 100 * 1024 * 1024)


def tsn_forward(x, params, *, num_segments, num_class,
                vmem_limit_bytes=None, frame_block_budget_bytes=None):
    """x: (B, num_segments*3, H, W) f32 NCHW video clip (RGB, new_length=1)."""
    wf, bf, wfc, bfc = params
    B, CT, H, W = x.shape
    C = 3                                   # RGB, new_length = 1
    T = num_segments
    assert CT == T * C, "channel dim must be num_segments * 3"
    K = num_class

    if vmem_limit_bytes is None:
        vmem_limit_bytes = _default_vmem_limit_bytes()
    if frame_block_budget_bytes is None:
        # Budget for the double-buffered frame block; leave headroom for the
        # (tiny) output blocks and internal scratch.
        frame_block_budget_bytes = max(vmem_limit_bytes - 8 * 1024 * 1024,
                                       vmem_limit_bytes // 2)

    # VMEM footprint of one segment (3 channels) inside a block, including the
    # (8, 128) tile padding of the last two dims.
    itemsize = jnp.dtype(x.dtype).itemsize
    Hp = -(-H // 8) * 8
    Wp = -(-W // 128) * 128

    Bb = _pick_batch_block(B)
    nb = B // Bb
    per_segment_bytes = Bb * C * Hp * Wp * itemsize
    # Largest Tb whose double-buffered frame block fits the budget (cdiv grid,
    # so Tb does NOT need to divide T).
    Tb = max(1, min(T, frame_block_budget_bytes // (2 * per_segment_bytes)))
    if nb == 1 and T >= 2:
        # Keep >= 2 parallel grid blocks for dual-TC chips when B == 1.
        Tb = min(Tb, pl.cdiv(T, 2))
    nt = pl.cdiv(T, Tb)
    TbC = Tb * C

    # Kernel output: per-frame-channel spatial sums, block-major so the output
    # block always equals its own trailing dims (layout-legal for any Bb, Tb).
    sums4 = pl.pallas_call(
        _pixel_sum_kernel,
        out_shape=jax.ShapeDtypeStruct((nb, nt, Bb, TbC), jnp.float32),
        grid_spec=pltpu.PrefetchScalarGridSpec(
            num_scalar_prefetch=0,
            grid=(nb, nt),
            in_specs=[
                # Raw NCHW slice; add pipeline_mode=pl.Buffered(3) only if a
                # profile shows exposed DMA at small Tb (and VMEM allows it).
                pl.BlockSpec((Bb, TbC, H, W), lambda b, t: (b, t, 0, 0)),
            ],
            out_specs=pl.BlockSpec((1, 1, Bb, TbC), lambda b, t: (b, t, 0, 0)),
        ),
        compiler_params=pltpu.CompilerParams(
            dimension_semantics=("parallel", "parallel"),
            vmem_limit_bytes=vmem_limit_bytes,
        ),
    )(x)

    # Undo the block-major layout and drop sums of padded channels from the
    # cdiv partial last T block (tiny array; negligible cost).
    sums = sums4.transpose(0, 2, 1, 3).reshape(B, nt * TbC)[:, : T * C]   # (B, T*3)

    # Exact algebraic fold (all linear, f32):
    #   mean_t((gap_t @ wf + bf) @ wfc + bfc)
    #     = (sum_{t,hw} pixels) / (T*H*W) @ (wf @ wfc) + (bf @ wfc + bfc)
    wf32, bf32 = wf.astype(jnp.float32), bf.astype(jnp.float32)
    wfc32, bfc32 = wfc.astype(jnp.float32), bfc.astype(jnp.float32)
    wc = wf32 @ wfc32                                     # (3, K)
    bc = bf32 @ wfc32 + bfc32                             # (1, K)
    pooled = sums.reshape(B, T, C).sum(axis=1) / jnp.float32(T * H * W)   # (B, 3)
    out = pooled @ wc + bc                                # (B, K)
    return {"categorical": out}


def tsn_reference(x, params, *, num_segments, num_class):
    """Pure-JAX f32 reference of the same forward semantics (stand-in backbone)."""
    wf, bf, wfc, bfc = params
    B, CT, H, W = x.shape
    T = num_segments
    body = x.reshape(B, T, 3, H, W).astype(jnp.float32)
    feat_in = body.mean(axis=(3, 4))                      # (B, T, 3)  spatial GAP
    feats = feat_in @ wf + bf                             # (B, T, 2048)
    logits = feats @ wfc + bfc                            # (B, T, K)
    return {"categorical": logits.mean(axis=1)}           # consensus avg


if __name__ == "__main__":
    def run_case(batch, num_segments, num_class, H, W, **fwd_kwargs):
        num_feats = 2048        # resnet -> new_fc = Linear(2048, num_class)
        sample_len = 3          # RGB, new_length = 1
        key = jax.random.PRNGKey(0)
        kx, k1, k2, k3 = jax.random.split(key, 4)
        x = jax.random.normal(kx, (batch, num_segments * sample_len, H, W),
                              dtype=jnp.float32)
        # deterministic parameter init (std=0.001 for new_fc as in _prepare_tsn)
        wf = jax.random.normal(k1, (sample_len, num_feats), dtype=jnp.float32) * 0.02
        bf = jnp.zeros((1, num_feats), dtype=jnp.float32)
        wfc = jax.random.normal(k2, (num_feats, num_class), dtype=jnp.float32) * 0.001
        bfc = jax.random.normal(k3, (1, num_class), dtype=jnp.float32) * 0.001
        params = (wf, bf, wfc, bfc)

        out = tsn_forward(x, params, num_segments=num_segments,
                          num_class=num_class, **fwd_kwargs)
        jax.block_until_ready(out["categorical"])
        ref = tsn_reference(x, params, num_segments=num_segments, num_class=num_class)
        assert out["categorical"].shape == (batch, num_class)
        assert jnp.allclose(out["categorical"], ref["categorical"],
                            atol=1e-4, rtol=1e-4), \
            f"mismatch vs reference (B={batch}, T={num_segments})"

    # small, deterministic configs consistent with the module
    run_case(batch=2, num_segments=4, num_class=8, H=16, W=16)
    # exercises the cdiv / partial-last-T-block path (T not divisible by Tb):
    # the tiny frame budget forces Tb=2 for T=5.
    run_case(batch=2, num_segments=5, num_class=6, H=16, W=16,
             frame_block_budget_bytes=100_000)

    print("KERNEL_OK")
</pallas_src>

<mosaic_0001>
module attributes {stable_mosaic.version = 11 : i64} {
  func.func @_pixel_sum_kernel(%arg0: i32, %arg1: i32, %arg2: memref<1x12x16x16xf32, #tpu.memory_space<vmem>>, %arg3: memref<1x1x1x12xf32, #tpu.memory_space<vmem>>) attributes {dimension_semantics = [#tpu.dimension_semantics<parallel>, #tpu.dimension_semantics<parallel>], iteration_bounds = array<i64: 2, 1>, scalar_prefetch = 0 : i64, scratch_operands = 0 : i64, tpu.core_type = #tpu.core_type<tc>, window_params = [{transform_indices = @transform_0, window_bounds = array<i64: 1, 12, 16, 16>}, {transform_indices = @transform_1, window_bounds = array<i64: 1, 1, 1, 12>}]} {
    %c0 = arith.constant 0 : index
    %c0_0 = arith.constant 0 : index
    %c0_1 = arith.constant 0 : index
    %c0_2 = arith.constant 0 : index
    %0 = vector.load %arg2[%c0, %c0_0, %c0_1, %c0_2] : memref<1x12x16x16xf32, #tpu.memory_space<vmem>>, vector<1x12x16x16xf32>
    %cst = arith.constant dense<0.000000e+00> : vector<1x12x16xf32>
    %1 = vector.multi_reduction <add>, %0, %cst [3] : vector<1x12x16x16xf32> to vector<1x12x16xf32>
    %cst_3 = arith.constant dense<0.000000e+00> : vector<1x12xf32>
    %2 = vector.multi_reduction <add>, %1, %cst_3 [2] : vector<1x12x16xf32> to vector<1x12xf32>
    %c0_4 = arith.constant 0 : index
    %c0_5 = arith.constant 0 : index
    %c0_6 = arith.constant 0 : index
    %c0_7 = arith.constant 0 : index
    %3 = vector.load %arg3[%c0_4, %c0_5, %c0_6, %c0_7] : memref<1x1x1x12xf32, #tpu.memory_space<vmem>>, vector<1x1x1x12xf32>
    %4 = vector.shape_cast %3 : vector<1x1x1x12xf32> to vector<1x12xf32>
    %5 = vector.shape_cast %2 : vector<1x12xf32> to vector<1x1x1x12xf32>
    tpu.vector_store %arg3[%c0_4, %c0_5, %c0_6, %c0_7], %5 {strides = array<i32>} : memref<1x1x1x12xf32, #tpu.memory_space<vmem>>, vector<1x1x1x12xf32>,
    return
  }
  func.func @transform_0(%arg0: i32, %arg1: i32) -> (i32, i32, i32, i32) {
    %c0_i32 = arith.constant 0 : i32
    %c0_i32_0 = arith.constant 0 : i32
    %c0_i32_1 = arith.constant 0 : i32
    return %arg0, %arg1, %c0_i32, %c0_i32_0 : i32, i32, i32, i32
  }
  func.func @transform_1(%arg0: i32, %arg1: i32) -> (i32, i32, i32, i32) {
    %c0_i32 = arith.constant 0 : i32
    %c0_i32_0 = arith.constant 0 : i32
    %c0_i32_1 = arith.constant 0 : i32
    return %arg0, %arg1, %c0_i32, %c0_i32_0 : i32, i32, i32, i32
  }
}

</mosaic_0001>

<bundles_post_ra>
// kernel: tpu_custom_call.1
= control target key start
LH: loop header
LB: loop body
LE: loop exit
PB: predicated region body
PF: predicated region fallthrough
CT: control target
= control target key end

     0   :  { %6 = vsyncpa [#allocation3], 0  ;;  %s1003_s0 = inlined_call_operand.hbm [shape: f32[2,12,16,16], index: 0, kind: input, shape index: {}]   ;;  %s1004_s1 = inlined_call_operand.hbm [shape: f32[2,1,1,12], index: 1, kind: output, shape index: {}]  }
   0x1   :  { %8 = vsyncpa [#allocation3 + $0x1], 0 }
   0x2   :  { %9 = vsyncpa [#allocation4], 0 }
   0x3   :  { %11 = vsyncpa [#allocation4 + $0x1], 0  ;;  %s723_s6 = smov 0   ;;  %s725_s7 = smov 0  }
   0x4   :  { %s727_s8 = smov 0   ;;  %s729_s9 = smov 0  }
   0x5   :  { %s731_s10 = smov 0   ;;  %s733_s11 = smov 0  }
   0x6 LB: > { %s519_s12 = sadd.s32 4294967295, %s707_s11   ;;  %s520_s13 = sadd.s32 4294967294, %s707_s11   ;;  %s707_s11 = sphi %s733_s11, %s17_s11   ;;  %s703_s10 = sphi %s731_s10, %s1019_s10   ;;  %s699_s9 = sphi %s729_s9, %s1018_s9   ;;  %s695_s8 = sphi %s727_s8, %s1017_s8   ;;  %s691_s7 = sphi %s725_s7, %s1016_s7   ;;  %s687_s6 = sphi %s723_s6, %s1015_s6  }
   0x7   : > { %s29_s14 = sadd.s32 1, %s703_s10  ;;  %s38_s15 = sadd.s32 1, %s695_s8 }
   0x8   : > { %p31_p0 = scmp.ge.s32.totalorder %s29_s14, 2  ;;  %p45_p1 = scmp.ne.s32.totalorder %s695_s8, %s691_s7 }
   0x9   : > { %p46_p2 = scmp.eq.s32.totalorder %s707_s11, 0  ;;  %p51_p3 = scmp.ne.s32.totalorder %s691_s7, %s687_s6 }
   0xa   : > { %s1021_s14 = smov (%p31_p0, %s29_s14), 0  ;;  %p52_p5 = scmp.eq.s32.totalorder %s519_s12, 0 }
   0xb   : > { %p764_p4 = por %p46_p2, %p45_p1  ;;  %s33_s17 = ssub.s32 %s703_s10, %s1021_s14 }
   0xc   : > { %p77_p6 = scmp.eq.s32.totalorder %s519_s12, 1  ;;  %p36_p7 = scmp.eq.s32.totalorder %s33_s17, 0 }
   0xd   : > { %p770_p8 = por %p52_p5, %p51_p3  ;;  %p83_p10 = scmp.eq.s32.totalorder %s520_s13, 1 }
   0xe   : > { %p774_p9 = por %p77_p6, %p45_p1  ;;  %p543_p13 = scmp.lt.s32.totalorder %s707_s11, 2 }
   0xf   : > { %s779_s20 = scalar_select %p36_p7, %s695_s8, %s38_s15  }
  0x10   : > { %s1008_s19 = scalar_select %p774_p9, 1, 0 }
  0x11   : > { %p781_p11 = por %p83_p10, %p51_p3  ;;  %s103_s22 = sand.u32 1, %s695_s8  }
  0x12   : > { %s528_s23 = smul.u32 192, %s103_s22  ;;  %p791_p0 = pnand %p543_p13, %p764_p4 }
  0x13   : > { %s1009_s21 = scalar_select %p781_p11, 1, 0 }
  0x14   : > { %s529_s24 = smul.u32 3072, %s703_s10  ;;  %s107_s29 = scalar_lea.vmem [#allocation2], %s528_s23 }
  0x15   : > { %s117_s30 = sshll.u32 %s107_s29, 4  ;;  %s803_s2 = scalar_lea.sflag [#allocation3], %s103_s22  ;;  %s800_s30 = int_to_ptr.vmem [resolvable:$true] %s117_s30 }
  0x16   : > { %s798_s28 = scalar_lea.hbm %s1003_s0, %s529_s24  ;;  %p597_p3 = pneg %p791_p0 }
  0x17   : > { %s595_s3 = scalar_lea.hbm %s798_s28, 3072  ;;  %s600_s12 = scalar_lea.hbm %s1003_s0, 6144 }
  0x18   : > { %p596_p2 = scmp.ne.s32.totalorder %s798_s28, %s595_s3  ;;  %p601_p6 = scmp.lt.u32.totalorder %s798_s28, %s1003_s0 }
  0x19   : > { %p602_p7 = scmp.lt.u32.totalorder %s600_s12, %s595_s3  ;;  %p604_p13 = scmp.lt.u32.totalorder %s595_s3, %s798_s28 }
  0x1a   : > { %p598_p4 = pnand %p597_p3, %p596_p2 }
  0x1b   : > { %p603_p10 = por %p602_p7, %p601_p6 }
  0x1c   : > { %p599_p5 = pneg %p598_p4 }
  0x1d   : > { %p605_p12 = por %p604_p13, %p603_p10 }
  0x1f   : > { %p606_p1 = pnand %p605_p12, %p599_p5 }
  0x21   : > { %609 = shalt.err (!%p606_p1)
}
  0x22   : > { %s610_s16 = scalar_lea.vmem %s800_s30, 3072  ;;  %s709_s17 = smov [#allocation2]  }
  0x23   : > { %p611_p2 = scmp.ne.s32.totalorder %s800_s30, %s610_s16  ;;  %s615_s22 = sshll.u32 %s709_s17, 4  ;;  %s616_s22 = int_to_ptr.vmem [resolvable:$false] %s615_s22 }
  0x24   : > { %s617_s23 = scalar_lea.vmem %s616_s22, 6144  ;;  %p618_p9 = scmp.lt.s32.totalorder %s800_s30, %s616_s22 }
  0x25   : > { %p613_p4 = pnand %p611_p2, %p597_p3  ;;  %p619_p6 = scmp.lt.s32.totalorder %s617_s23, %s610_s16 }
  0x27   : > { %p614_p11 = pneg %p613_p4  ;;  %p620_p7 = por %p619_p6, %p618_p9 }
  0x29   : > { %p621_p10 = pnand %p620_p7, %p614_p11 }
  0x2b   : > { %624 = shalt.err (!%p621_p10)
}
  0x2c   : > { %s710_s24 = smov 128   ;;  %s711_s26 = smov 8  }
  0x2d   : > { %538 = dma.hbm_to_vmem [thread:$0]  (!%p791_p0), %s798_s28, 3072, %s800_s30, %s803_s2, %s710_s24, %s710_s24, %s711_s26  }
  0x2e   : > { %p125_p12 = scmp.lt.s32.totalorder %s707_s11, 3  ;;  %p1011_p1 = scmp.ge.s32.totalorder %s707_s11, 1 }
  0x30   : > { %p126_p3 = pnand %p1011_p1, %p125_p12 }
  0x31   : > { %s835_s27 = sand.u32 (!%p126_p3), 1, %s691_s7  }
  0x32   : > { %129 = sbr.rel (%p126_p3) target bundleno = 410 (0x19a), region = 24  ;;  %s132_s3 = scalar_lea.sflag (!%p126_p3), [#allocation3], %s835_s27 }
  0x33   : > { %s530_s29 = smul.u32 (!%p126_p3), 192, %s835_s27 }
  0x35   : > { %s839_s4 = scalar_lea.vmem (!%p126_p3), [#allocation2], %s530_s29 }
  0x39   : > { %678 = dma.done.wait (%p770_p8), %s132_s3, 3072  }
  0x3a   : > { %680 = vsyncadd (%p770_p8), %s132_s3, 4294964224  ;;  %vm178_vm0 = vcmask 130048   ;;  %v156_v0 = vld [vmem:[%s839_s4 + $0x10] sm:$0xff]  ;;  %v154_v1 = vld [vmem:[%s839_s4] sm:$0xff]  ;;  %v275_v56 = vlaneseq  ;;  %vm286_vm1 = vcmask 130112   ;;  %vm387_vm2 = vcmask 1041409  }
  0x3b   : > { %v157_v2 = vld [vmem:[%s839_s4 + $0x18] sm:$0xff]  ;;  %v185_v3 = vsel %vm178_vm0, %v156_v0, 0.0  ;;  %v179_v4 = vsel %vm178_vm0, %v154_v1, 0.0  ;;  %v155_v5 = vld [vmem:[%s839_s4 + $0x8] sm:$0xff]  ;;  %v158_v9 = vld [vmem:[%s839_s4 + $0x20] sm:$0xff]  ;;  %vm389_vm3 = vcmask 1042434  }
  0x3c   : > { %186 = vadd.xlane.f32.xlu1 %v185_v3  ;;  %180 = vadd.xlane.f32.xlu0 %v179_v4  ;;  %v188_v6 = vsel %vm178_vm0, %v157_v2, 0.0  ;;  %v182_v7 = vsel %vm178_vm0, %v155_v5, 0.0  ;;  %v159_v8 = vld [vmem:[%s839_s4 + $0x28] sm:$0xff]  ;;  %v191_v11 = vsel %vm178_vm0, %v158_v9, 0.0  ;;  %v161_v12 = vld [vmem:[%s839_s4 + $0x38] sm:$0xff]  ;;  %v160_v13 = vld [vmem:[%s839_s4 + $0x30] sm:$0xff] }
  0x3d   : > { %v194_v10 = vsel %vm178_vm0, %v159_v8, 0.0  ;;  %v200_v14 = vsel %vm178_vm0, %v161_v12, 0.0  ;;  %v197_v15 = vsel %vm178_vm0, %v160_v13, 0.0  ;;  %v163_v16 = vld [vmem:[%s839_s4 + $0x48] sm:$0xff]  ;;  %v162_v17 = vld [vmem:[%s839_s4 + $0x40] sm:$0xff]  ;;  %v165_v20 = vld [vmem:[%s839_s4 + $0x58] sm:$0xff] }
  0x3e   : > { %v206_v18 = vsel %vm178_vm0, %v163_v16, 0.0  ;;  %v203_v19 = vsel %vm178_vm0, %v162_v17, 0.0  ;;  %v164_v21 = vld [vmem:[%s839_s4 + $0x50] sm:$0xff]  ;;  %v212_v22 = vsel %vm178_vm0, %v165_v20, 0.0  ;;  %v171_v24 = vld [vmem:[%s839_s4 + $0x88] sm:$0xff]  ;;  %v170_v25 = vld [vmem:[%s839_s4 + $0x80] sm:$0xff] }
  0x3f   : > { %v209_v23 = vsel %vm178_vm0, %v164_v21, 0.0  ;;  %v230_v26 = vsel %vm178_vm0, %v171_v24, 0.0  ;;  %v227_v27 = vsel %vm178_vm0, %v170_v25, 0.0  ;;  %v173_v28 = vld [vmem:[%s839_s4 + $0x98] sm:$0xff]  ;;  %v172_v29 = vld [vmem:[%s839_s4 + $0x90] sm:$0xff]  ;;  %v167_v32 = vld [vmem:[%s839_s4 + $0x68] sm:$0xff] }
  0x40   : > { %189 = vadd.xlane.f32.xlu1 %v188_v6  ;;  %183 = vadd.xlane.f32.xlu0 %v182_v7  ;;  %v236_v30 = vsel %vm178_vm0, %v173_v28, 0.0  ;;  %v233_v31 = vsel %vm178_vm0, %v172_v29, 0.0  ;;  %v166_v33 = vld [vmem:[%s839_s4 + $0x60] sm:$0xff]  ;;  %v218_v34 = vsel %vm178_vm0, %v167_v32, 0.0  ;;  %v175_v36 = vld [vmem:[%s839_s4 + $0xa8] sm:$0xff]  ;;  %v169_v40 = vld [vmem:[%s839_s4 + $0x78] sm:$0xff] }
  0x41   : > { %v215_v35 = vsel %vm178_vm0, %v166_v33, 0.0  ;;  %v174_v37 = vld [vmem:[%s839_s4 + $0xa0] sm:$0xff]  ;;  %v242_v38 = vsel %vm178_vm0, %v175_v36, 0.0  ;;  %v168_v41 = vld [vmem:[%s839_s4 + $0x70] sm:$0xff]  ;;  %v224_v42 = vsel %vm178_vm0, %v169_v40, 0.0  ;;  %v177_v44 = vld [vmem:[%s839_s4 + $0xb8] sm:$0xff] }
  0x42   : > { %v239_v39 = vsel %vm178_vm0, %v174_v37, 0.0  ;;  %v221_v43 = vsel %vm178_vm0, %v168_v41, 0.0  ;;  %v176_v45 = vld [vmem:[%s839_s4 + $0xb0] sm:$0xff]  ;;  %v248_v46 = vsel %vm178_vm0, %v177_v44, 0.0  ;;  %v276_v59 = vand.u32 127, %v275_v56  ;;  %s525_s18 = sshll.u32 %s699_s9, 4 }
  0x43   : > { %v245_v47 = vsel %vm178_vm0, %v176_v45, 0.0  ;;  %v278_v63 = vshrl.u32 %v275_v56, 7  ;;  %vm391_vm4 = vcmask 1043459   ;;  %vm393_vm5 = vcmask 1044484   ;;  %s152_s25 = scalar_lea.vmem [#allocation5], %s835_s27  ;;  %s953_s5 = scalar_lea.hbm %s1004_s1, %s525_s18 }
  0x44   : > { %195 = vadd.xlane.f32.xlu1 %v194_v10  ;;  %192 = vadd.xlane.f32.xlu0 %v191_v11  ;;  %v281_v62 = vadd.s32 4294967288, %v276_v59  ;;  %vm395_vm6 = vcmask 1045509   ;;  %vm397_vm7 = vcmask 1046534   ;;  %vm399_vm8 = vcmask 1047559   ;;  %s441_s28 = sshll.u32 %s152_s25, 4  ;;  %s428_s9 = scalar_lea.sflag [#allocation4], %s835_s27  ;;  %s955_s28 = int_to_ptr.vmem [resolvable:$true] %s441_s28 }
  0x45   : > { %v897_v3 = vsub.s32 %v276_v59, %v278_v63  ;;  %vm409_vm9 = vcmask 125952   ;;  %vm425_vm10 = vcmask 90112   ;;  %s625_s12 = scalar_lea.vmem %s955_s28, 16  ;;  %p1012_p9 = scmp.ne.s32.totalorder %s1008_s19, 0 }
  0x46   : > { %v895_v2 = vsub.s32 %v281_v62, %v278_v63  ;;  %p626_p8 = scmp.ne.s32.totalorder %s955_s28, %s625_s12  ;;  %s712_s13 = smov [#allocation5]  }
  0x47   : > { %s629_s15 = sshll.u32 %s712_s13, 4  ;;  %s630_s15 = int_to_ptr.vmem [resolvable:$false] %s629_s15 }
  0x48   : > { %201 = vadd.xlane.f32.xlu1 %v200_v14  ;;  %198 = vadd.xlane.f32.xlu0 %v197_v15  ;;  %p627_p11 = pnand %p626_p8, %p1012_p9  ;;  %s631_s16 = scalar_lea.vmem %s630_s15, 32 }
  0x49   : > { %p632_p5 = scmp.lt.s32.totalorder %s955_s28, %s630_s15  ;;  %p633_p13 = scmp.lt.s32.totalorder %s631_s16, %s625_s12 }
  0x4a   : > { %p628_p0 = pneg %p627_p11 }
  0x4b   : > { %p634_p2 = por %p633_p13, %p632_p5 }
  0x4c   : > { %207 = vadd.xlane.f32.xlu1 %v206_v18  ;;  %204 = vadd.xlane.f32.xlu0 %v203_v19 }
  0x4d   : > { %p635_p4 = pnand %p634_p2, %p628_p0 }
  0x50   : > { %213 = vadd.xlane.f32.xlu1 %v212_v22  ;;  %210 = vadd.xlane.f32.xlu0 %v209_v23 }
  0x54   : > { %231 = vadd.xlane.f32.xlu1 %v230_v26  ;;  %228 = vadd.xlane.f32.xlu0 %v227_v27 }
  0x58   : > { %237 = vadd.xlane.f32.xlu1 %v236_v30  ;;  %234 = vadd.xlane.f32.xlu0 %v233_v31 }
  0x5c   : > { %219 = vadd.xlane.f32.xlu1 %v218_v34  ;;  %216 = vadd.xlane.f32.xlu0 %v215_v35 }
  0x60   : > { %243 = vadd.xlane.f32.xlu1 %v242_v38  ;;  %240 = vadd.xlane.f32.xlu0 %v239_v39 }
  0x64   : > { %225 = vadd.xlane.f32.xlu1 %v224_v42  ;;  %222 = vadd.xlane.f32.xlu0 %v221_v43 }
  0x68   : > { %249 = vadd.xlane.f32.xlu1 %v248_v46  ;;  %246 = vadd.xlane.f32.xlu0 %v245_v47 }
  0xc9   : > { %v187_v48 = vpop.xlane.xlu1 %186  ;;  %v181_v49 = vpop.xlane.xlu0 %180 }
  0xca   : > { %v291_v10 = vrot.slane %v187_v48, %v897_v3  ;;  %v280_v11 = vrot.slane %v181_v49, %v897_v3 }
  0xcd   : > { %v190_v50 = vpop.xlane.xlu1 %189  ;;  %v184_v51 = vpop.xlane.xlu0 %183 }
  0xce   : > { %v295_v6 = vrot.slane %v190_v50, %v895_v2  ;;  %v285_v7 = vrot.slane %v184_v51, %v895_v2 }
  0xd0   : > { %v296_v18 = vsel %vm286_vm1, %v295_v6, %v291_v10  ;;  %v287_v19 = vsel %vm286_vm1, %v285_v7, %v280_v11 }
  0xd1   : > { %v196_v52 = vpop.xlane.xlu1 %195  ;;  %v193_v53 = vpop.xlane.xlu0 %192  ;;  %v388_v28 = vsel %vm387_vm2, %v296_v18, %v287_v19 }
  0xd2   : > { %v304_v8 = vrot.slane %v196_v52, %v895_v2  ;;  %v300_v9 = vrot.slane %v193_v53, %v897_v3 }
  0xd4   : > { %v305_v20 = vsel %vm286_vm1, %v304_v8, %v300_v9 }
  0xd5   : > { %v202_v54 = vpop.xlane.xlu1 %201  ;;  %v199_v55 = vpop.xlane.xlu0 %198  ;;  %v390_v30 = vsel %vm389_vm3, %v305_v20, %v388_v28 }
  0xd6   : > { %v313_v12 = vrot.slane %v202_v54, %v895_v2  ;;  %v309_v13 = vrot.slane %v199_v55, %v897_v3 }
  0xd8   : > { %v314_v23 = vsel %vm286_vm1, %v313_v12, %v309_v13 }
  0xd9   : > { %v208_v57 = vpop.xlane.xlu1 %207  ;;  %v205_v58 = vpop.xlane.xlu0 %204  ;;  %v392_v31 = vsel %vm391_vm4, %v314_v23, %v390_v30 }
  0xda   : > { %v322_v16 = vrot.slane %v208_v57, %v895_v2  ;;  %v318_v17 = vrot.slane %v205_v58, %v897_v3 }
  0xdc   : > { %v323_v29 = vsel %vm286_vm1, %v322_v16, %v318_v17 }
  0xdd   : > { %v214_v60 = vpop.xlane.xlu1 %213  ;;  %v211_v61 = vpop.xlane.xlu0 %210  ;;  %v394_v35 = vsel %vm393_vm5, %v323_v29, %v392_v31 }
  0xde   : > { %v331_v21 = vrot.slane %v214_v60, %v895_v2  ;;  %v327_v22 = vrot.slane %v211_v61, %v897_v3 }
  0xe0   : > { %v332_v32 = vsel %vm286_vm1, %v331_v21, %v327_v22 }
  0xe1   : > { %v893_v0 = vpop.xlane.xlu1 %231  ;;  %v229_v1 = vpop.xlane.xlu0 %228  ;;  %v396_v45 = vsel %vm395_vm6, %v332_v32, %v394_v35 }
  0xe2   : > { %v358_v41 = vrot.slane %v893_v0, %v895_v2  ;;  %v354_v42 = vrot.slane %v229_v1, %v897_v3 }
  0xe4   : > { %v359_v53 = vsel %vm286_vm1, %v358_v41, %v354_v42 }
  0xe5   : > { %v238_v4 = vpop.xlane.xlu1 %237  ;;  %v235_v5 = vpop.xlane.xlu0 %234 }
  0xe6   : > { %v367_v33 = vrot.slane %v238_v4, %v895_v2  ;;  %v363_v34 = vrot.slane %v235_v5, %v897_v3 }
  0xe8   : > { %v368_v46 = vsel %vm286_vm1, %v367_v33, %v363_v34 }
  0xe9   : > { %v220_v14 = vpop.xlane.xlu1 %219  ;;  %v217_v15 = vpop.xlane.xlu0 %216  ;;  %v401_v57 = vsel %vm387_vm2, %v368_v46, %v359_v53 }
  0xea   : > { %v340_v24 = vrot.slane %v220_v14, %v895_v2  ;;  %v336_v25 = vrot.slane %v217_v15, %v897_v3 }
  0xec   : > { %v341_v36 = vsel %vm286_vm1, %v340_v24, %v336_v25 }
  0xed   : > { %v244_v26 = vpop.xlane.xlu1 %243  ;;  %v241_v27 = vpop.xlane.xlu0 %240  ;;  %v398_v48 = vsel %vm397_vm7, %v341_v36, %v396_v45 }
  0xee   : > { %v376_v37 = vrot.slane %v244_v26, %v895_v2  ;;  %v372_v38 = vrot.slane %v241_v27, %v897_v3 }
  0xf0   : > { %v377_v49 = vsel %vm286_vm1, %v376_v37, %v372_v38 }
  0xf1   : > { %v226_v39 = vpop.xlane.xlu1 %225  ;;  %v223_v40 = vpop.xlane.xlu0 %222  ;;  %v402_v59 = vsel %vm389_vm3, %v377_v49, %v401_v57 }
  0xf2   : > { %v349_v43 = vrot.slane %v226_v39, %v895_v2  ;;  %v345_v44 = vrot.slane %v223_v40, %v897_v3 }
  0xf4   : > { %v350_v47 = vsel %vm286_vm1, %v349_v43, %v345_v44 }
  0xf5   : > { %v250_v50 = vpop.xlane.xlu1 %249  ;;  %v247_v51 = vpop.xlane.xlu0 %246  ;;  %v400_v52 = vsel %vm399_vm8, %v350_v47, %v398_v48 }
  0xf6   : > { %v385_v54 = vrot.slane %v250_v50, %v895_v2  ;;  %v381_v55 = vrot.slane %v247_v51, %v897_v3  ;;  %v406_v56 = vsel %vm178_vm0, %v400_v52, 0.0 }
  0xf7   : > { %407 = vadd.xlane.f32.xlu0 %v406_v56 }
  0xf8   : > { %v386_v58 = vsel %vm286_vm1, %v385_v54, %v381_v55 }
  0xf9   : > { %v403_v60 = vsel %vm391_vm4, %v386_v58, %v402_v59 }
  0xfa   : > { %v410_v61 = vsel %vm409_vm9, %v403_v60, 0.0 }
  0xfb   : > { %411 = vadd.xlane.f32.xlu1 %v410_v61 }
 0x184   : > { %v408_v62 = vpop.xlane.xlu0 %407 }
 0x185   : > { %v418_v0 = vrot.slane %v408_v62, %v897_v3 }
 0x188   : > { %v412_v63 = vpop.xlane.xlu1 %411 }
 0x189   : > { %v422_v1 = vrot.slane %v412_v63, %v895_v2 }
 0x18b   : > { %v423_v4 = vsel %vm286_vm1, %v422_v1, %v418_v0 }
 0x18c   : > { %426 = vst.msk [vmem:[%s152_s25] sm:$0x1] %vm425_vm10, %v423_v4 }
 0x18d   : > { %638 = shalt.err (!%p635_p4)
}
 0x18e   : > { %s639_s17 = scalar_lea.hbm %s953_s5, 16  ;;  %s643_s24 = scalar_lea.hbm %s1004_s1, 32 }
 0x18f   : > { %p640_p6 = scmp.ne.s32.totalorder %s953_s5, %s639_s17  ;;  %p644_p12 = scmp.lt.u32.totalorder %s953_s5, %s1004_s1 }
 0x190   : > { %p645_p1 = scmp.lt.u32.totalorder %s643_s24, %s639_s17  ;;  %p647_p8 = scmp.lt.u32.totalorder %s639_s17, %s953_s5 }
 0x191   : > { %p641_p7 = pnand %p640_p6, %p1012_p9 }
 0x192   : > { %p646_p3 = por %p645_p1, %p644_p12 }
 0x193   : > { %p642_p10 = pneg %p641_p7 }
 0x194   : > { %p648_p11 = por %p647_p8, %p646_p3 }
 0x196   : > { %p649_p0 = pnand %p648_p11, %p642_p10 }
 0x198   : > { %652 = shalt.err (!%p649_p0)
}
 0x199   : > { %533 = dma.vmem_to_hbm [thread:$0]  (%p1012_p9), %s955_s28, 16, %s953_s5, %s428_s9  }
 0x19a PF: > { %s453_s29 = sand.u32 1, %s687_s6   ;;  %p1013_p5 = scmp.ne.s32.totalorder %s1009_s21, 0 }
 0x19b   : > { %p1014_p13 = scmp.ge.s32.totalorder %s707_s11, 2  ;;  %s454_s3 = scalar_lea.sflag [#allocation4], %s453_s29 }
 0x19d   : > { %p540_p2 = pnand %p1014_p13, %p1013_p5 }
 0x19f   : > { %682 = dma.done.wait (!%p540_p2), %s454_s3, 16  }
 0x1a0   : > { %684 = vsyncadd (!%p540_p2), %s454_s3, 4294967280  ;;  %s17_s11 = sadd.s32 1, %s707_s11   ;;  %s1015_s6 = smov %s691_s7 }
 0x1a1   : > { %p14_p4 = scmp.ge.s32.totalorder %s17_s11, 4   ;;  %s1016_s7 = smov %s695_s8 }
 0x1a2   : > { %s1017_s8 = smov %s779_s20  ;;  %s1018_s9 = smov %s703_s10 }
 0x1a3   : > { %s1019_s10 = smov %s1021_s14  ;;  %16 = sbr.rel (!%p14_p4) target bundleno = 6 (0x6), region = 69 }
 0x1aa   :  { %458 = vsyncpa [#allocation3], 1 }
 0x1ab   :  { %460 = vsyncpa [#allocation3 + $0x1], 1 }
 0x1ac   :  { %461 = vsyncpa [#allocation4], 1 }
 0x1ad   :  { %463 = vsyncpa [#allocation4 + $0x1], 1 }

</bundles_post_ra>
